<compile_context>
chip_gen: v7x
topology: tpu7x:2x2x1
jax: 0.10.0
libtpu: 0.0.40
codegen_flags: <defaults>
</compile_context>

<pallas_src>
import functools

import jax
import jax.numpy as jnp
from jax import lax
from jax.experimental import pallas as pl
from jax.experimental.pallas import tpu as pltpu


# ----------------------------------------------------------------------------
# Pallas kernel:  acc += W @ relu?(X) over K tiles;  out = acc*scale + shift.
# Channel-major operands: W (Cout, tk), X (tk, tm), out (Cout, tm).
# ----------------------------------------------------------------------------
def _mm_affine_kernel(w_ref, x_ref, scale_ref, shift_ref, o_ref, acc_ref,
                      *, apply_relu_input):
    k = pl.program_id(2)

    @pl.when(k == 0)
    def _init():
        acc_ref[...] = jnp.zeros_like(acc_ref)

    x = x_ref[...]
    if apply_relu_input:
        x = jnp.maximum(x, 0.0)
    acc_ref[...] += jnp.dot(w_ref[...], x, preferred_element_type=jnp.float32)

    @pl.when(k == pl.num_programs(2) - 1)
    def _finalize():
        o_ref[...] = acc_ref[...] * scale_ref[...] + shift_ref[...]


def _pick_k_tile(K, max_k=1024):
    """Single K block when small; otherwise a 128-aligned divisor of K."""
    if K <= max_k:
        return K
    for tk in (1024, 512, 256, 128):
        if K % tk == 0:
            return tk
    return K  # fallback: one (large) K block


def _mm_affine_t(w_mat, x_bkm, scale, shift, *, apply_relu_input=False, tm=512):
    """y[b] = (w_mat @ relu?(x_bkm[b])) * scale[:, None] + shift[:, None]."""
    B, K, M = x_bkm.shape
    Cout, Kw = w_mat.shape
    assert K == Kw
    tm = min(tm, M)            # lane-dense tile; full-M block when M is small
    tk = _pick_k_tile(K)
    nm = pl.cdiv(M, tm)
    nk = pl.cdiv(K, tk)

    kernel = functools.partial(_mm_affine_kernel,
                               apply_relu_input=apply_relu_input)
    cost = pl.CostEstimate(
        flops=2 * B * Cout * K * M,
        transcendentals=0,
        bytes_accessed=4 * (B * K * M + Cout * K + B * Cout * M + 2 * Cout))

    return pl.pallas_call(
        kernel,
        out_shape=jax.ShapeDtypeStruct((B, Cout, M), jnp.float32),
        grid=(B, nm, nk),
        in_specs=[
            pl.BlockSpec((Cout, tk), lambda b, m, k: (0, k)),
            pl.BlockSpec((None, tk, tm), lambda b, m, k: (b, k, m)),
            pl.BlockSpec((Cout, 1), lambda b, m, k: (0, 0)),
            pl.BlockSpec((Cout, 1), lambda b, m, k: (0, 0)),
        ],
        out_specs=pl.BlockSpec((None, Cout, tm), lambda b, m, k: (b, 0, m)),
        scratch_shapes=[pltpu.VMEM((Cout, tm), jnp.float32)],
        compiler_params=pltpu.CompilerParams(
            dimension_semantics=("parallel", "parallel", "arbitrary"),
            vmem_limit_bytes=32 * 1024 * 1024),
        cost_estimate=cost,
    )(w_mat, x_bkm,
      scale.reshape(Cout, 1).astype(jnp.float32),
      shift.reshape(Cout, 1).astype(jnp.float32))


# ----------------------------------------------------------------------------
# Layers built on the matmul kernel (all stay in NCHW; reshapes are free).
# ----------------------------------------------------------------------------
def _conv1x1_bn(x_nchw, w_oihw, gamma, beta, mean, var, eps=1e-5):
    """Conv2d(k=1, bias=False) + BatchNorm2d (eval mode), fused in the kernel."""
    N, Cin, H, W = x_nchw.shape
    Cout = w_oihw.shape[0]
    w_mat = w_oihw[:, :, 0, 0]                    # (Cout, Cin)
    scale = gamma / jnp.sqrt(var + eps)
    shift = beta - mean * scale
    y = _mm_affine_t(w_mat, x_nchw.reshape(N, Cin, H * W), scale, shift)
    return y.reshape(N, Cout, H, W)


def _im2col_3x3_s2(x_nchw):
    """3x3 / stride 2 / pad 1 patch extraction -> (9*C, N*Ho*Wo) (transposed)."""
    N, C, H, W = x_nchw.shape
    Ho = (H + 2 - 3) // 2 + 1
    Wo = (W + 2 - 3) // 2 + 1
    xp = jnp.pad(x_nchw, ((0, 0), (0, 0), (1, 1), (1, 1)))
    taps = [xp[:, :, ky:ky + 2 * Ho:2, kx:kx + 2 * Wo:2]
            for ky in range(3) for kx in range(3)]          # each (N, C, Ho, Wo)
    cols = jnp.stack(taps, axis=0)                          # (9, N, C, Ho, Wo)
    cols = jnp.transpose(cols, (0, 2, 1, 3, 4))             # (9, C, N, Ho, Wo)
    return cols.reshape(9 * C, N * Ho * Wo), (N, Ho, Wo)


def _conv3x3_s2(x_nchw, w_oihw, bias, *, apply_relu=False):
    """Conv2d(k=3, stride=2, pad=1, bias=True); optional ReLU on the input."""
    # TODO(synk): if these levels ever grow, move the im2col into the kernel
    # (polyphase taps) to drop the patch-matrix HBM traffic; p5/p6 are the
    # smallest tensors in this module so it is kept wrapper-side for safety.
    Cout, Cin = w_oihw.shape[0], w_oihw.shape[1]
    cols, (N, Ho, Wo) = _im2col_3x3_s2(x_nchw)
    # K index = (ky*3 + kx)*Cin + ci on both the weight and the patch matrix.
    w_mat = jnp.transpose(w_oihw, (0, 2, 3, 1)).reshape(Cout, 9 * Cin)
    ones = jnp.ones((Cout,), jnp.float32)
    y = _mm_affine_t(w_mat, cols[None], ones, bias,
                     apply_relu_input=apply_relu)           # (1, Cout, N*Ho*Wo)
    return jnp.transpose(y.reshape(Cout, N, Ho, Wo), (1, 0, 2, 3))


# ----------------------------------------------------------------------------
# Full forward of BiFPN_EntryLevel (NCHW in, NCHW out).
# ----------------------------------------------------------------------------
def bifpn_entry_level(p3, p4, p5, params):
    p6 = _conv3x3_s2(p5, params["p6_w"], params["p6_b"])
    # create_p7 = ReLU -> Conv2d; the ReLU is applied inside the Pallas kernel.
    p7 = _conv3x3_s2(p6, params["p7_w"], params["p7_b"], apply_relu=True)

    reduced = []
    for i, x in enumerate((p3, p4, p5)):
        reduced.append(
            _conv1x1_bn(x, params["red_w"][i], params["bn_g"][i],
                        params["bn_b"][i], params["bn_m"][i], params["bn_v"][i]))
    p3o, p4o, p5o = reduced
    return (p3o, p4o, p5o, p6, p7)


# ----------------------------------------------------------------------------
# Pure-JAX reference (lax.conv) for a correctness check.
# ----------------------------------------------------------------------------
def _ref_forward(p3, p4, p5, params, eps=1e-5):
    dn = ("NCHW", "OIHW", "NCHW")

    def conv(x, w, stride, pad):
        return lax.conv_general_dilated(
            x, w, (stride, stride), [(pad, pad), (pad, pad)],
            dimension_numbers=dn)

    def bn(x, g, b, m, v):
        s = g / jnp.sqrt(v + eps)
        return x * s[None, :, None, None] + (b - m * s)[None, :, None, None]

    p6 = conv(p5, params["p6_w"], 2, 1) + params["p6_b"][None, :, None, None]
    p7 = conv(jnp.maximum(p6, 0.0), params["p7_w"], 2, 1) \
        + params["p7_b"][None, :, None, None]
    outs = []
    for i, x in enumerate((p3, p4, p5)):
        outs.append(bn(conv(x, params["red_w"][i], 1, 0),
                       params["bn_g"][i], params["bn_b"][i],
                       params["bn_m"][i], params["bn_v"][i]))
    return (outs[0], outs[1], outs[2], p6, p7)


def _make_params(key, in_channels, bifpn_channel):
    keys = jax.random.split(key, 16)
    params = {"red_w": [], "bn_g": [], "bn_b": [], "bn_m": [], "bn_v": []}
    for i, cin in enumerate(in_channels):
        params["red_w"].append(
            0.1 * jax.random.normal(keys[i], (bifpn_channel, cin, 1, 1), jnp.float32))
        params["bn_g"].append(
            1.0 + 0.1 * jax.random.normal(keys[3 + i], (bifpn_channel,), jnp.float32))
        params["bn_b"].append(
            0.1 * jax.random.normal(keys[6 + i], (bifpn_channel,), jnp.float32))
        params["bn_m"].append(
            0.05 * jax.random.normal(keys[9 + i], (bifpn_channel,), jnp.float32))
        params["bn_v"].append(
            0.5 + jnp.abs(jax.random.normal(keys[12 + i], (bifpn_channel,), jnp.float32)))
    params["p6_w"] = 0.1 * jax.random.normal(
        keys[15], (bifpn_channel, in_channels[-1], 3, 3), jnp.float32)
    params["p6_b"] = 0.1 * jax.random.normal(
        jax.random.fold_in(key, 100), (bifpn_channel,), jnp.float32)
    params["p7_w"] = 0.1 * jax.random.normal(
        jax.random.fold_in(key, 101), (bifpn_channel, bifpn_channel, 3, 3), jnp.float32)
    params["p7_b"] = 0.1 * jax.random.normal(
        jax.random.fold_in(key, 102), (bifpn_channel,), jnp.float32)
    return params


if __name__ == "__main__":
    key = jax.random.PRNGKey(0)
    in_channels = [4, 6, 8]
    bifpn_channel = 8

    k3, k4, k5 = jax.random.split(jax.random.fold_in(key, 1), 3)
    p3 = jax.random.normal(k3, (2, in_channels[0], 16, 16), jnp.float32)  # 1/8 scale
    p4 = jax.random.normal(k4, (2, in_channels[1], 8, 8), jnp.float32)    # 1/16 scale
    p5 = jax.random.normal(k5, (2, in_channels[2], 4, 4), jnp.float32)    # 1/32 scale

    params = _make_params(jax.random.fold_in(key, 2), in_channels, bifpn_channel)

    fwd = jax.jit(lambda a, b, c: bifpn_entry_level(a, b, c, params))
    outs = fwd(p3, p4, p5)
    outs = jax.block_until_ready(outs)

    refs = _ref_forward(p3, p4, p5, params)
    for o, r in zip(outs, refs):
        assert o.shape == r.shape, (o.shape, r.shape)
        assert jnp.allclose(o, r, atol=1e-4, rtol=1e-4), float(jnp.max(jnp.abs(o - r)))

    print("KERNEL_OK")
</pallas_src>

<mosaic_0001>
module attributes {stable_mosaic.version = 11 : i64} {
  func.func @_mm_affine_kernel(%arg0: i32, %arg1: i32, %arg2: i32, %arg3: memref<8x72xf32, #tpu.memory_space<vmem>>, %arg4: memref<1x72x8xf32, #tpu.memory_space<vmem>>, %arg5: memref<8x1xf32, #tpu.memory_space<vmem>>, %arg6: memref<8x1xf32, #tpu.memory_space<vmem>>, %arg7: memref<1x8x8xf32, #tpu.memory_space<vmem>>, %arg8: memref<8x8xf32, #tpu.memory_space<vmem>>) attributes {dimension_semantics = [#tpu.dimension_semantics<parallel>, #tpu.dimension_semantics<parallel>, #tpu.dimension_semantics<arbitrary>], iteration_bounds = array<i64: 1, 1, 1>, scalar_prefetch = 0 : i64, scratch_operands = 1 : i64, tpu.core_type = #tpu.core_type<tc>, window_params = [{transform_indices = @transform_0, window_bounds = array<i64: 8, 72>}, {transform_indices = @transform_1, window_bounds = array<i64: 1, 72, 8>}, {pipeline_mode = #tpu.pipeline_mode<synchronous>, transform_indices = @transform_2, window_bounds = array<i64: 8, 1>}, {pipeline_mode = #tpu.pipeline_mode<synchronous>, transform_indices = @transform_3, window_bounds = array<i64: 8, 1>}, {transform_indices = @transform_4, window_bounds = array<i64: 1, 8, 8>}]} {
    %c0_i32 = arith.constant 0 : i32
    %0 = arith.cmpi eq, %arg2, %c0_i32 : i32
    %1 = arith.extui %0 : i1 to i32
    %c0_i32_0 = arith.constant 0 : i32
    %2 = arith.cmpi ne, %1, %c0_i32_0 : i32
    scf.if %2 {
      %cst_11 = arith.constant 0.000000e+00 : f32
      %13 = vector.broadcast %cst_11 : f32 to vector<8x8xf32>
      %c0_12 = arith.constant 0 : index
      %c0_13 = arith.constant 0 : index
      %14 = vector.load %arg8[%c0_12, %c0_13] : memref<8x8xf32, #tpu.memory_space<vmem>>, vector<8x8xf32>
      tpu.vector_store %arg8[%c0_12, %c0_13], %13 {strides = array<i32>} : memref<8x8xf32, #tpu.memory_space<vmem>>, vector<8x8xf32>,
    } else {
    }
    %c0 = arith.constant 0 : index
    %c0_1 = arith.constant 0 : index
    %c0_2 = arith.constant 0 : index
    %3 = vector.load %arg4[%c0, %c0_1, %c0_2] : memref<1x72x8xf32, #tpu.memory_space<vmem>>, vector<1x72x8xf32>
    %4 = vector.shape_cast %3 : vector<1x72x8xf32> to vector<72x8xf32>
    %c0_3 = arith.constant 0 : index
    %c0_4 = arith.constant 0 : index
    %5 = vector.load %arg8[%c0_3, %c0_4] : memref<8x8xf32, #tpu.memory_space<vmem>>, vector<8x8xf32>
    %c0_5 = arith.constant 0 : index
    %c0_6 = arith.constant 0 : index
    %6 = vector.load %arg3[%c0_5, %c0_6] : memref<8x72xf32, #tpu.memory_space<vmem>>, vector<8x72xf32>
    %cst = arith.constant dense<0.000000e+00> : vector<8x8xf32>
    %7 = tpu.matmul %6, %4, %cst {dimension_numbers = #tpu.dot_dimension_numbers<[1], [0], [0], [1], [0, 0, 1, 1], [], []>} : vector<8x72xf32>, vector<72x8xf32>, vector<8x8xf32> -> vector<8x8xf32>
    %8 = arith.addf %5, %7 : vector<8x8xf32>
    %c0_7 = arith.constant 0 : index
    %c0_8 = arith.constant 0 : index
    %9 = vector.load %arg8[%c0_7, %c0_8] : memref<8x8xf32, #tpu.memory_space<vmem>>, vector<8x8xf32>
    tpu.vector_store %arg8[%c0_7, %c0_8], %8 {strides = array<i32>} : memref<8x8xf32, #tpu.memory_space<vmem>>, vector<8x8xf32>,
    %c0_i32_9 = arith.constant 0 : i32
    %10 = arith.cmpi eq, %arg2, %c0_i32_9 : i32
    %11 = arith.extui %10 : i1 to i32
    %c0_i32_10 = arith.constant 0 : i32
    %12 = arith.cmpi ne, %11, %c0_i32_10 : i32
    scf.if %12 {
      %c0_11 = arith.constant 0 : index
      %c0_12 = arith.constant 0 : index
      %13 = vector.load %arg8[%c0_11, %c0_12] : memref<8x8xf32, #tpu.memory_space<vmem>>, vector<8x8xf32>
      %c0_13 = arith.constant 0 : index
      %c0_14 = arith.constant 0 : index
      %14 = vector.load %arg5[%c0_13, %c0_14] : memref<8x1xf32, #tpu.memory_space<vmem>>, vector<8x1xf32>
      %15 = vector.broadcast %14 : vector<8x1xf32> to vector<8x8xf32>
      %16 = arith.mulf %13, %15 : vector<8x8xf32>
      %c0_15 = arith.constant 0 : index
      %c0_16 = arith.constant 0 : index
      %17 = vector.load %arg6[%c0_15, %c0_16] : memref<8x1xf32, #tpu.memory_space<vmem>>, vector<8x1xf32>
      %18 = vector.broadcast %17 : vector<8x1xf32> to vector<8x8xf32>
      %19 = arith.addf %16, %18 : vector<8x8xf32>
      %c0_17 = arith.constant 0 : index
      %c0_18 = arith.constant 0 : index
      %c0_19 = arith.constant 0 : index
      %20 = vector.load %arg7[%c0_17, %c0_18, %c0_19] : memref<1x8x8xf32, #tpu.memory_space<vmem>>, vector<1x8x8xf32>
      %21 = vector.shape_cast %20 : vector<1x8x8xf32> to vector<8x8xf32>
      %22 = vector.shape_cast %19 : vector<8x8xf32> to vector<1x8x8xf32>
      tpu.vector_store %arg7[%c0_17, %c0_18, %c0_19], %22 {strides = array<i32>} : memref<1x8x8xf32, #tpu.memory_space<vmem>>, vector<1x8x8xf32>,
    } else {
    }
    return
  }
  func.func @transform_0(%arg0: i32, %arg1: i32, %arg2: i32) -> (i32, i32) {
    %c0_i32 = arith.constant 0 : i32
    %c0_i32_0 = arith.constant 0 : i32
    return %c0_i32, %arg2 : i32, i32
  }
  func.func @transform_1(%arg0: i32, %arg1: i32, %arg2: i32) -> (i32, i32, i32) {
    %c0_i32 = arith.constant 0 : i32
    return %arg0, %arg2, %arg1 : i32, i32, i32
  }
  func.func @transform_2(%arg0: i32, %arg1: i32, %arg2: i32) -> (i32, i32) {
    %c0_i32 = arith.constant 0 : i32
    %c0_i32_0 = arith.constant 0 : i32
    %c0_i32_1 = arith.constant 0 : i32
    return %c0_i32, %c0_i32_0 : i32, i32
  }
  func.func @transform_3(%arg0: i32, %arg1: i32, %arg2: i32) -> (i32, i32) {
    %c0_i32 = arith.constant 0 : i32
    %c0_i32_0 = arith.constant 0 : i32
    %c0_i32_1 = arith.constant 0 : i32
    return %c0_i32, %c0_i32_0 : i32, i32
  }
  func.func @transform_4(%arg0: i32, %arg1: i32, %arg2: i32) -> (i32, i32, i32) {
    %c0_i32 = arith.constant 0 : i32
    %c0_i32_0 = arith.constant 0 : i32
    return %arg0, %c0_i32, %arg1 : i32, i32, i32
  }
}

module attributes {stable_mosaic.version = 11 : i64} {
  func.func @_mm_affine_kernel(%arg0: i32, %arg1: i32, %arg2: i32, %arg3: memref<8x72xf32, #tpu.memory_space<vmem>>, %arg4: memref<1x72x2xf32, #tpu.memory_space<vmem>>, %arg5: memref<8x1xf32, #tpu.memory_space<vmem>>, %arg6: memref<8x1xf32, #tpu.memory_space<vmem>>, %arg7: memref<1x8x2xf32, #tpu.memory_space<vmem>>, %arg8: memref<8x2xf32, #tpu.memory_space<vmem>>) attributes {dimension_semantics = [#tpu.dimension_semantics<parallel>, #tpu.dimension_semantics<parallel>, #tpu.dimension_semantics<arbitrary>], iteration_bounds = array<i64: 1, 1, 1>, scalar_prefetch = 0 : i64, scratch_operands = 1 : i64, tpu.core_type = #tpu.core_type<tc>, window_params = [{transform_indices = @transform_0, window_bounds = array<i64: 8, 72>}, {transform_indices = @transform_1, window_bounds = array<i64: 1, 72, 2>}, {pipeline_mode = #tpu.pipeline_mode<synchronous>, transform_indices = @transform_2, window_bounds = array<i64: 8, 1>}, {pipeline_mode = #tpu.pipeline_mode<synchronous>, transform_indices = @transform_3, window_bounds = array<i64: 8, 1>}, {transform_indices = @transform_4, window_bounds = array<i64: 1, 8, 2>}]} {
    %c0_i32 = arith.constant 0 : i32
    %0 = arith.cmpi eq, %arg2, %c0_i32 : i32
    %1 = arith.extui %0 : i1 to i32
    %c0_i32_0 = arith.constant 0 : i32
    %2 = arith.cmpi ne, %1, %c0_i32_0 : i32
    scf.if %2 {
      %cst_12 = arith.constant 0.000000e+00 : f32
      %15 = vector.broadcast %cst_12 : f32 to vector<8x2xf32>
      %c0_13 = arith.constant 0 : index
      %c0_14 = arith.constant 0 : index
      %16 = vector.load %arg8[%c0_13, %c0_14] : memref<8x2xf32, #tpu.memory_space<vmem>>, vector<8x2xf32>
      tpu.vector_store %arg8[%c0_13, %c0_14], %15 {strides = array<i32>} : memref<8x2xf32, #tpu.memory_space<vmem>>, vector<8x2xf32>,
    } else {
    }
    %c0 = arith.constant 0 : index
    %c0_1 = arith.constant 0 : index
    %c0_2 = arith.constant 0 : index
    %3 = vector.load %arg4[%c0, %c0_1, %c0_2] : memref<1x72x2xf32, #tpu.memory_space<vmem>>, vector<1x72x2xf32>
    %4 = vector.shape_cast %3 : vector<1x72x2xf32> to vector<72x2xf32>
    %cst = arith.constant 0.000000e+00 : f32
    %5 = vector.broadcast %cst : f32 to vector<72x2xf32>
    %6 = arith.maximumf %4, %5 : vector<72x2xf32>
    %c0_3 = arith.constant 0 : index
    %c0_4 = arith.constant 0 : index
    %7 = vector.load %arg8[%c0_3, %c0_4] : memref<8x2xf32, #tpu.memory_space<vmem>>, vector<8x2xf32>
    %c0_5 = arith.constant 0 : index
    %c0_6 = arith.constant 0 : index
    %8 = vector.load %arg3[%c0_5, %c0_6] : memref<8x72xf32, #tpu.memory_space<vmem>>, vector<8x72xf32>
    %cst_7 = arith.constant dense<0.000000e+00> : vector<8x2xf32>
    %9 = tpu.matmul %8, %6, %cst_7 {dimension_numbers = #tpu.dot_dimension_numbers<[1], [0], [0], [1], [0, 0, 1, 1], [], []>} : vector<8x72xf32>, vector<72x2xf32>, vector<8x2xf32> -> vector<8x2xf32>
    %10 = arith.addf %7, %9 : vector<8x2xf32>
    %c0_8 = arith.constant 0 : index
    %c0_9 = arith.constant 0 : index
    %11 = vector.load %arg8[%c0_8, %c0_9] : memref<8x2xf32, #tpu.memory_space<vmem>>, vector<8x2xf32>
    tpu.vector_store %arg8[%c0_8, %c0_9], %10 {strides = array<i32>} : memref<8x2xf32, #tpu.memory_space<vmem>>, vector<8x2xf32>,
    %c0_i32_10 = arith.constant 0 : i32
    %12 = arith.cmpi eq, %arg2, %c0_i32_10 : i32
    %13 = arith.extui %12 : i1 to i32
    %c0_i32_11 = arith.constant 0 : i32
    %14 = arith.cmpi ne, %13, %c0_i32_11 : i32
    scf.if %14 {
      %c0_12 = arith.constant 0 : index
      %c0_13 = arith.constant 0 : index
      %15 = vector.load %arg8[%c0_12, %c0_13] : memref<8x2xf32, #tpu.memory_space<vmem>>, vector<8x2xf32>
      %c0_14 = arith.constant 0 : index
      %c0_15 = arith.constant 0 : index
      %16 = vector.load %arg5[%c0_14, %c0_15] : memref<8x1xf32, #tpu.memory_space<vmem>>, vector<8x1xf32>
      %17 = vector.broadcast %16 : vector<8x1xf32> to vector<8x2xf32>
      %18 = arith.mulf %15, %17 : vector<8x2xf32>
      %c0_16 = arith.constant 0 : index
      %c0_17 = arith.constant 0 : index
      %19 = vector.load %arg6[%c0_16, %c0_17] : memref<8x1xf32, #tpu.memory_space<vmem>>, vector<8x1xf32>
      %20 = vector.broadcast %19 : vector<8x1xf32> to vector<8x2xf32>
      %21 = arith.addf %18, %20 : vector<8x2xf32>
      %c0_18 = arith.constant 0 : index
      %c0_19 = arith.constant 0 : index
      %c0_20 = arith.constant 0 : index
      %22 = vector.load %arg7[%c0_18, %c0_19, %c0_20] : memref<1x8x2xf32, #tpu.memory_space<vmem>>, vector<1x8x2xf32>
      %23 = vector.shape_cast %22 : vector<1x8x2xf32> to vector<8x2xf32>
      %24 = vector.shape_cast %21 : vector<8x2xf32> to vector<1x8x2xf32>
      tpu.vector_store %arg7[%c0_18, %c0_19, %c0_20], %24 {strides = array<i32>} : memref<1x8x2xf32, #tpu.memory_space<vmem>>, vector<1x8x2xf32>,
    } else {
    }
    return
  }
  func.func @transform_0(%arg0: i32, %arg1: i32, %arg2: i32) -> (i32, i32) {
    %c0_i32 = arith.constant 0 : i32
    %c0_i32_0 = arith.constant 0 : i32
    return %c0_i32, %arg2 : i32, i32
  }
  func.func @transform_1(%arg0: i32, %arg1: i32, %arg2: i32) -> (i32, i32, i32) {
    %c0_i32 = arith.constant 0 : i32
    return %arg0, %arg2, %arg1 : i32, i32, i32
  }
  func.func @transform_2(%arg0: i32, %arg1: i32, %arg2: i32) -> (i32, i32) {
    %c0_i32 = arith.constant 0 : i32
    %c0_i32_0 = arith.constant 0 : i32
    %c0_i32_1 = arith.constant 0 : i32
    return %c0_i32, %c0_i32_0 : i32, i32
  }
  func.func @transform_3(%arg0: i32, %arg1: i32, %arg2: i32) -> (i32, i32) {
    %c0_i32 = arith.constant 0 : i32
    %c0_i32_0 = arith.constant 0 : i32
    %c0_i32_1 = arith.constant 0 : i32
    return %c0_i32, %c0_i32_0 : i32, i32
  }
  func.func @transform_4(%arg0: i32, %arg1: i32, %arg2: i32) -> (i32, i32, i32) {
    %c0_i32 = arith.constant 0 : i32
    %c0_i32_0 = arith.constant 0 : i32
    return %arg0, %c0_i32, %arg1 : i32, i32, i32
  }
}

module attributes {stable_mosaic.version = 11 : i64} {
  func.func @_mm_affine_kernel(%arg0: i32, %arg1: i32, %arg2: i32, %arg3: memref<8x4xf32, #tpu.memory_space<vmem>>, %arg4: memref<1x4x256xf32, #tpu.memory_space<vmem>>, %arg5: memref<8x1xf32, #tpu.memory_space<vmem>>, %arg6: memref<8x1xf32, #tpu.memory_space<vmem>>, %arg7: memref<1x8x256xf32, #tpu.memory_space<vmem>>, %arg8: memref<8x256xf32, #tpu.memory_space<vmem>>) attributes {dimension_semantics = [#tpu.dimension_semantics<parallel>, #tpu.dimension_semantics<parallel>, #tpu.dimension_semantics<arbitrary>], iteration_bounds = array<i64: 2, 1, 1>, scalar_prefetch = 0 : i64, scratch_operands = 1 : i64, tpu.core_type = #tpu.core_type<tc>, window_params = [{transform_indices = @transform_0, window_bounds = array<i64: 8, 4>}, {transform_indices = @transform_1, window_bounds = array<i64: 1, 4, 256>}, {pipeline_mode = #tpu.pipeline_mode<synchronous>, transform_indices = @transform_2, window_bounds = array<i64: 8, 1>}, {pipeline_mode = #tpu.pipeline_mode<synchronous>, transform_indices = @transform_3, window_bounds = array<i64: 8, 1>}, {transform_indices = @transform_4, window_bounds = array<i64: 1, 8, 256>}]} {
    %c0_i32 = arith.constant 0 : i32
    %0 = arith.cmpi eq, %arg2, %c0_i32 : i32
    %1 = arith.extui %0 : i1 to i32
    %c0_i32_0 = arith.constant 0 : i32
    %2 = arith.cmpi ne, %1, %c0_i32_0 : i32
    scf.if %2 {
      %cst_11 = arith.constant 0.000000e+00 : f32
      %13 = vector.broadcast %cst_11 : f32 to vector<8x256xf32>
      %c0_12 = arith.constant 0 : index
      %c0_13 = arith.constant 0 : index
      %14 = vector.load %arg8[%c0_12, %c0_13] : memref<8x256xf32, #tpu.memory_space<vmem>>, vector<8x256xf32>
      tpu.vector_store %arg8[%c0_12, %c0_13], %13 {strides = array<i32>} : memref<8x256xf32, #tpu.memory_space<vmem>>, vector<8x256xf32>,
    } else {
    }
    %c0 = arith.constant 0 : index
    %c0_1 = arith.constant 0 : index
    %c0_2 = arith.constant 0 : index
    %3 = vector.load %arg4[%c0, %c0_1, %c0_2] : memref<1x4x256xf32, #tpu.memory_space<vmem>>, vector<1x4x256xf32>
    %4 = vector.shape_cast %3 : vector<1x4x256xf32> to vector<4x256xf32>
    %c0_3 = arith.constant 0 : index
    %c0_4 = arith.constant 0 : index
    %5 = vector.load %arg8[%c0_3, %c0_4] : memref<8x256xf32, #tpu.memory_space<vmem>>, vector<8x256xf32>
    %c0_5 = arith.constant 0 : index
    %c0_6 = arith.constant 0 : index
    %6 = vector.load %arg3[%c0_5, %c0_6] : memref<8x4xf32, #tpu.memory_space<vmem>>, vector<8x4xf32>
    %cst = arith.constant dense<0.000000e+00> : vector<8x256xf32>
    %7 = tpu.matmul %6, %4, %cst {dimension_numbers = #tpu.dot_dimension_numbers<[1], [0], [0], [1], [0, 0, 1, 1], [], []>} : vector<8x4xf32>, vector<4x256xf32>, vector<8x256xf32> -> vector<8x256xf32>
    %8 = arith.addf %5, %7 : vector<8x256xf32>
    %c0_7 = arith.constant 0 : index
    %c0_8 = arith.constant 0 : index
    %9 = vector.load %arg8[%c0_7, %c0_8] : memref<8x256xf32, #tpu.memory_space<vmem>>, vector<8x256xf32>
    tpu.vector_store %arg8[%c0_7, %c0_8], %8 {strides = array<i32>} : memref<8x256xf32, #tpu.memory_space<vmem>>, vector<8x256xf32>,
    %c0_i32_9 = arith.constant 0 : i32
    %10 = arith.cmpi eq, %arg2, %c0_i32_9 : i32
    %11 = arith.extui %10 : i1 to i32
    %c0_i32_10 = arith.constant 0 : i32
    %12 = arith.cmpi ne, %11, %c0_i32_10 : i32
    scf.if %12 {
      %c0_11 = arith.constant 0 : index
      %c0_12 = arith.constant 0 : index
      %13 = vector.load %arg8[%c0_11, %c0_12] : memref<8x256xf32, #tpu.memory_space<vmem>>, vector<8x256xf32>
      %c0_13 = arith.constant 0 : index
      %c0_14 = arith.constant 0 : index
      %14 = vector.load %arg5[%c0_13, %c0_14] : memref<8x1xf32, #tpu.memory_space<vmem>>, vector<8x1xf32>
      %15 = vector.broadcast %14 : vector<8x1xf32> to vector<8x256xf32>
      %16 = arith.mulf %13, %15 : vector<8x256xf32>
      %c0_15 = arith.constant 0 : index
      %c0_16 = arith.constant 0 : index
      %17 = vector.load %arg6[%c0_15, %c0_16] : memref<8x1xf32, #tpu.memory_space<vmem>>, vector<8x1xf32>
      %18 = vector.broadcast %17 : vector<8x1xf32> to vector<8x256xf32>
      %19 = arith.addf %16, %18 : vector<8x256xf32>
      %c0_17 = arith.constant 0 : index
      %c0_18 = arith.constant 0 : index
      %c0_19 = arith.constant 0 : index
      %20 = vector.load %arg7[%c0_17, %c0_18, %c0_19] : memref<1x8x256xf32, #tpu.memory_space<vmem>>, vector<1x8x256xf32>
      %21 = vector.shape_cast %20 : vector<1x8x256xf32> to vector<8x256xf32>
      %22 = vector.shape_cast %19 : vector<8x256xf32> to vector<1x8x256xf32>
      tpu.vector_store %arg7[%c0_17, %c0_18, %c0_19], %22 {strides = array<i32>} : memref<1x8x256xf32, #tpu.memory_space<vmem>>, vector<1x8x256xf32>,
    } else {
    }
    return
  }
  func.func @transform_0(%arg0: i32, %arg1: i32, %arg2: i32) -> (i32, i32) {
    %c0_i32 = arith.constant 0 : i32
    %c0_i32_0 = arith.constant 0 : i32
    return %c0_i32, %arg2 : i32, i32
  }
  func.func @transform_1(%arg0: i32, %arg1: i32, %arg2: i32) -> (i32, i32, i32) {
    %c0_i32 = arith.constant 0 : i32
    return %arg0, %arg2, %arg1 : i32, i32, i32
  }
  func.func @transform_2(%arg0: i32, %arg1: i32, %arg2: i32) -> (i32, i32) {
    %c0_i32 = arith.constant 0 : i32
    %c0_i32_0 = arith.constant 0 : i32
    %c0_i32_1 = arith.constant 0 : i32
    return %c0_i32, %c0_i32_0 : i32, i32
  }
  func.func @transform_3(%arg0: i32, %arg1: i32, %arg2: i32) -> (i32, i32) {
    %c0_i32 = arith.constant 0 : i32
    %c0_i32_0 = arith.constant 0 : i32
    %c0_i32_1 = arith.constant 0 : i32
    return %c0_i32, %c0_i32_0 : i32, i32
  }
  func.func @transform_4(%arg0: i32, %arg1: i32, %arg2: i32) -> (i32, i32, i32) {
    %c0_i32 = arith.constant 0 : i32
    %c0_i32_0 = arith.constant 0 : i32
    return %arg0, %c0_i32, %arg1 : i32, i32, i32
  }
}

module attributes {stable_mosaic.version = 11 : i64} {
  func.func @_mm_affine_kernel(%arg0: i32, %arg1: i32, %arg2: i32, %arg3: memref<8x6xf32, #tpu.memory_space<vmem>>, %arg4: memref<1x6x64xf32, #tpu.memory_space<vmem>>, %arg5: memref<8x1xf32, #tpu.memory_space<vmem>>, %arg6: memref<8x1xf32, #tpu.memory_space<vmem>>, %arg7: memref<1x8x64xf32, #tpu.memory_space<vmem>>, %arg8: memref<8x64xf32, #tpu.memory_space<vmem>>) attributes {dimension_semantics = [#tpu.dimension_semantics<parallel>, #tpu.dimension_semantics<parallel>, #tpu.dimension_semantics<arbitrary>], iteration_bounds = array<i64: 2, 1, 1>, scalar_prefetch = 0 : i64, scratch_operands = 1 : i64, tpu.core_type = #tpu.core_type<tc>, window_params = [{transform_indices = @transform_0, window_bounds = array<i64: 8, 6>}, {transform_indices = @transform_1, window_bounds = array<i64: 1, 6, 64>}, {pipeline_mode = #tpu.pipeline_mode<synchronous>, transform_indices = @transform_2, window_bounds = array<i64: 8, 1>}, {pipeline_mode = #tpu.pipeline_mode<synchronous>, transform_indices = @transform_3, window_bounds = array<i64: 8, 1>}, {transform_indices = @transform_4, window_bounds = array<i64: 1, 8, 64>}]} {
    %c0_i32 = arith.constant 0 : i32
    %0 = arith.cmpi eq, %arg2, %c0_i32 : i32
    %1 = arith.extui %0 : i1 to i32
    %c0_i32_0 = arith.constant 0 : i32
    %2 = arith.cmpi ne, %1, %c0_i32_0 : i32
    scf.if %2 {
      %cst_11 = arith.constant 0.000000e+00 : f32
      %13 = vector.broadcast %cst_11 : f32 to vector<8x64xf32>
      %c0_12 = arith.constant 0 : index
      %c0_13 = arith.constant 0 : index
      %14 = vector.load %arg8[%c0_12, %c0_13] : memref<8x64xf32, #tpu.memory_space<vmem>>, vector<8x64xf32>
      tpu.vector_store %arg8[%c0_12, %c0_13], %13 {strides = array<i32>} : memref<8x64xf32, #tpu.memory_space<vmem>>, vector<8x64xf32>,
    } else {
    }
    %c0 = arith.constant 0 : index
    %c0_1 = arith.constant 0 : index
    %c0_2 = arith.constant 0 : index
    %3 = vector.load %arg4[%c0, %c0_1, %c0_2] : memref<1x6x64xf32, #tpu.memory_space<vmem>>, vector<1x6x64xf32>
    %4 = vector.shape_cast %3 : vector<1x6x64xf32> to vector<6x64xf32>
    %c0_3 = arith.constant 0 : index
    %c0_4 = arith.constant 0 : index
    %5 = vector.load %arg8[%c0_3, %c0_4] : memref<8x64xf32, #tpu.memory_space<vmem>>, vector<8x64xf32>
    %c0_5 = arith.constant 0 : index
    %c0_6 = arith.constant 0 : index
    %6 = vector.load %arg3[%c0_5, %c0_6] : memref<8x6xf32, #tpu.memory_space<vmem>>, vector<8x6xf32>
    %cst = arith.constant dense<0.000000e+00> : vector<8x64xf32>
    %7 = tpu.matmul %6, %4, %cst {dimension_numbers = #tpu.dot_dimension_numbers<[1], [0], [0], [1], [0, 0, 1, 1], [], []>} : vector<8x6xf32>, vector<6x64xf32>, vector<8x64xf32> -> vector<8x64xf32>
    %8 = arith.addf %5, %7 : vector<8x64xf32>
    %c0_7 = arith.constant 0 : index
    %c0_8 = arith.constant 0 : index
    %9 = vector.load %arg8[%c0_7, %c0_8] : memref<8x64xf32, #tpu.memory_space<vmem>>, vector<8x64xf32>
    tpu.vector_store %arg8[%c0_7, %c0_8], %8 {strides = array<i32>} : memref<8x64xf32, #tpu.memory_space<vmem>>, vector<8x64xf32>,
    %c0_i32_9 = arith.constant 0 : i32
    %10 = arith.cmpi eq, %arg2, %c0_i32_9 : i32
    %11 = arith.extui %10 : i1 to i32
    %c0_i32_10 = arith.constant 0 : i32
    %12 = arith.cmpi ne, %11, %c0_i32_10 : i32
    scf.if %12 {
      %c0_11 = arith.constant 0 : index
      %c0_12 = arith.constant 0 : index
      %13 = vector.load %arg8[%c0_11, %c0_12] : memref<8x64xf32, #tpu.memory_space<vmem>>, vector<8x64xf32>
      %c0_13 = arith.constant 0 : index
      %c0_14 = arith.constant 0 : index
      %14 = vector.load %arg5[%c0_13, %c0_14] : memref<8x1xf32, #tpu.memory_space<vmem>>, vector<8x1xf32>
      %15 = vector.broadcast %14 : vector<8x1xf32> to vector<8x64xf32>
      %16 = arith.mulf %13, %15 : vector<8x64xf32>
      %c0_15 = arith.constant 0 : index
      %c0_16 = arith.constant 0 : index
      %17 = vector.load %arg6[%c0_15, %c0_16] : memref<8x1xf32, #tpu.memory_space<vmem>>, vector<8x1xf32>
      %18 = vector.broadcast %17 : vector<8x1xf32> to vector<8x64xf32>
      %19 = arith.addf %16, %18 : vector<8x64xf32>
      %c0_17 = arith.constant 0 : index
      %c0_18 = arith.constant 0 : index
      %c0_19 = arith.constant 0 : index
      %20 = vector.load %arg7[%c0_17, %c0_18, %c0_19] : memref<1x8x64xf32, #tpu.memory_space<vmem>>, vector<1x8x64xf32>
      %21 = vector.shape_cast %20 : vector<1x8x64xf32> to vector<8x64xf32>
      %22 = vector.shape_cast %19 : vector<8x64xf32> to vector<1x8x64xf32>
      tpu.vector_store %arg7[%c0_17, %c0_18, %c0_19], %22 {strides = array<i32>} : memref<1x8x64xf32, #tpu.memory_space<vmem>>, vector<1x8x64xf32>,
    } else {
    }
    return
  }
  func.func @transform_0(%arg0: i32, %arg1: i32, %arg2: i32) -> (i32, i32) {
    %c0_i32 = arith.constant 0 : i32
    %c0_i32_0 = arith.constant 0 : i32
    return %c0_i32, %arg2 : i32, i32
  }
  func.func @transform_1(%arg0: i32, %arg1: i32, %arg2: i32) -> (i32, i32, i32) {
    %c0_i32 = arith.constant 0 : i32
    return %arg0, %arg2, %arg1 : i32, i32, i32
  }
  func.func @transform_2(%arg0: i32, %arg1: i32, %arg2: i32) -> (i32, i32) {
    %c0_i32 = arith.constant 0 : i32
    %c0_i32_0 = arith.constant 0 : i32
    %c0_i32_1 = arith.constant 0 : i32
    return %c0_i32, %c0_i32_0 : i32, i32
  }
  func.func @transform_3(%arg0: i32, %arg1: i32, %arg2: i32) -> (i32, i32) {
    %c0_i32 = arith.constant 0 : i32
    %c0_i32_0 = arith.constant 0 : i32
    %c0_i32_1 = arith.constant 0 : i32
    return %c0_i32, %c0_i32_0 : i32, i32
  }
  func.func @transform_4(%arg0: i32, %arg1: i32, %arg2: i32) -> (i32, i32, i32) {
    %c0_i32 = arith.constant 0 : i32
    %c0_i32_0 = arith.constant 0 : i32
    return %arg0, %c0_i32, %arg1 : i32, i32, i32
  }
}

module attributes {stable_mosaic.version = 11 : i64} {
  func.func @_mm_affine_kernel(%arg0: i32, %arg1: i32, %arg2: i32, %arg3: memref<8x8xf32, #tpu.memory_space<vmem>>, %arg4: memref<1x8x16xf32, #tpu.memory_space<vmem>>, %arg5: memref<8x1xf32, #tpu.memory_space<vmem>>, %arg6: memref<8x1xf32, #tpu.memory_space<vmem>>, %arg7: memref<1x8x16xf32, #tpu.memory_space<vmem>>, %arg8: memref<8x16xf32, #tpu.memory_space<vmem>>) attributes {dimension_semantics = [#tpu.dimension_semantics<parallel>, #tpu.dimension_semantics<parallel>, #tpu.dimension_semantics<arbitrary>], iteration_bounds = array<i64: 2, 1, 1>, scalar_prefetch = 0 : i64, scratch_operands = 1 : i64, tpu.core_type = #tpu.core_type<tc>, window_params = [{transform_indices = @transform_0, window_bounds = array<i64: 8, 8>}, {transform_indices = @transform_1, window_bounds = array<i64: 1, 8, 16>}, {pipeline_mode = #tpu.pipeline_mode<synchronous>, transform_indices = @transform_2, window_bounds = array<i64: 8, 1>}, {pipeline_mode = #tpu.pipeline_mode<synchronous>, transform_indices = @transform_3, window_bounds = array<i64: 8, 1>}, {transform_indices = @transform_4, window_bounds = array<i64: 1, 8, 16>}]} {
    %c0_i32 = arith.constant 0 : i32
    %0 = arith.cmpi eq, %arg2, %c0_i32 : i32
    %1 = arith.extui %0 : i1 to i32
    %c0_i32_0 = arith.constant 0 : i32
    %2 = arith.cmpi ne, %1, %c0_i32_0 : i32
    scf.if %2 {
      %cst_11 = arith.constant 0.000000e+00 : f32
      %13 = vector.broadcast %cst_11 : f32 to vector<8x16xf32>
      %c0_12 = arith.constant 0 : index
      %c0_13 = arith.constant 0 : index
      %14 = vector.load %arg8[%c0_12, %c0_13] : memref<8x16xf32, #tpu.memory_space<vmem>>, vector<8x16xf32>
      tpu.vector_store %arg8[%c0_12, %c0_13], %13 {strides = array<i32>} : memref<8x16xf32, #tpu.memory_space<vmem>>, vector<8x16xf32>,
    } else {
    }
    %c0 = arith.constant 0 : index
    %c0_1 = arith.constant 0 : index
    %c0_2 = arith.constant 0 : index
    %3 = vector.load %arg4[%c0, %c0_1, %c0_2] : memref<1x8x16xf32, #tpu.memory_space<vmem>>, vector<1x8x16xf32>
    %4 = vector.shape_cast %3 : vector<1x8x16xf32> to vector<8x16xf32>
    %c0_3 = arith.constant 0 : index
    %c0_4 = arith.constant 0 : index
    %5 = vector.load %arg8[%c0_3, %c0_4] : memref<8x16xf32, #tpu.memory_space<vmem>>, vector<8x16xf32>
    %c0_5 = arith.constant 0 : index
    %c0_6 = arith.constant 0 : index
    %6 = vector.load %arg3[%c0_5, %c0_6] : memref<8x8xf32, #tpu.memory_space<vmem>>, vector<8x8xf32>
    %cst = arith.constant dense<0.000000e+00> : vector<8x16xf32>
    %7 = tpu.matmul %6, %4, %cst {dimension_numbers = #tpu.dot_dimension_numbers<[1], [0], [0], [1], [0, 0, 1, 1], [], []>} : vector<8x8xf32>, vector<8x16xf32>, vector<8x16xf32> -> vector<8x16xf32>
    %8 = arith.addf %5, %7 : vector<8x16xf32>
    %c0_7 = arith.constant 0 : index
    %c0_8 = arith.constant 0 : index
    %9 = vector.load %arg8[%c0_7, %c0_8] : memref<8x16xf32, #tpu.memory_space<vmem>>, vector<8x16xf32>
    tpu.vector_store %arg8[%c0_7, %c0_8], %8 {strides = array<i32>} : memref<8x16xf32, #tpu.memory_space<vmem>>, vector<8x16xf32>,
    %c0_i32_9 = arith.constant 0 : i32
    %10 = arith.cmpi eq, %arg2, %c0_i32_9 : i32
    %11 = arith.extui %10 : i1 to i32
    %c0_i32_10 = arith.constant 0 : i32
    %12 = arith.cmpi ne, %11, %c0_i32_10 : i32
    scf.if %12 {
      %c0_11 = arith.constant 0 : index
      %c0_12 = arith.constant 0 : index
      %13 = vector.load %arg8[%c0_11, %c0_12] : memref<8x16xf32, #tpu.memory_space<vmem>>, vector<8x16xf32>
      %c0_13 = arith.constant 0 : index
      %c0_14 = arith.constant 0 : index
      %14 = vector.load %arg5[%c0_13, %c0_14] : memref<8x1xf32, #tpu.memory_space<vmem>>, vector<8x1xf32>
      %15 = vector.broadcast %14 : vector<8x1xf32> to vector<8x16xf32>
      %16 = arith.mulf %13, %15 : vector<8x16xf32>
      %c0_15 = arith.constant 0 : index
      %c0_16 = arith.constant 0 : index
      %17 = vector.load %arg6[%c0_15, %c0_16] : memref<8x1xf32, #tpu.memory_space<vmem>>, vector<8x1xf32>
      %18 = vector.broadcast %17 : vector<8x1xf32> to vector<8x16xf32>
      %19 = arith.addf %16, %18 : vector<8x16xf32>
      %c0_17 = arith.constant 0 : index
      %c0_18 = arith.constant 0 : index
      %c0_19 = arith.constant 0 : index
      %20 = vector.load %arg7[%c0_17, %c0_18, %c0_19] : memref<1x8x16xf32, #tpu.memory_space<vmem>>, vector<1x8x16xf32>
      %21 = vector.shape_cast %20 : vector<1x8x16xf32> to vector<8x16xf32>
      %22 = vector.shape_cast %19 : vector<8x16xf32> to vector<1x8x16xf32>
      tpu.vector_store %arg7[%c0_17, %c0_18, %c0_19], %22 {strides = array<i32>} : memref<1x8x16xf32, #tpu.memory_space<vmem>>, vector<1x8x16xf32>,
    } else {
    }
    return
  }
  func.func @transform_0(%arg0: i32, %arg1: i32, %arg2: i32) -> (i32, i32) {
    %c0_i32 = arith.constant 0 : i32
    %c0_i32_0 = arith.constant 0 : i32
    return %c0_i32, %arg2 : i32, i32
  }
  func.func @transform_1(%arg0: i32, %arg1: i32, %arg2: i32) -> (i32, i32, i32) {
    %c0_i32 = arith.constant 0 : i32
    return %arg0, %arg2, %arg1 : i32, i32, i32
  }
  func.func @transform_2(%arg0: i32, %arg1: i32, %arg2: i32) -> (i32, i32) {
    %c0_i32 = arith.constant 0 : i32
    %c0_i32_0 = arith.constant 0 : i32
    %c0_i32_1 = arith.constant 0 : i32
    return %c0_i32, %c0_i32_0 : i32, i32
  }
  func.func @transform_3(%arg0: i32, %arg1: i32, %arg2: i32) -> (i32, i32) {
    %c0_i32 = arith.constant 0 : i32
    %c0_i32_0 = arith.constant 0 : i32
    %c0_i32_1 = arith.constant 0 : i32
    return %c0_i32, %c0_i32_0 : i32, i32
  }
  func.func @transform_4(%arg0: i32, %arg1: i32, %arg2: i32) -> (i32, i32, i32) {
    %c0_i32 = arith.constant 0 : i32
    %c0_i32_0 = arith.constant 0 : i32
    return %arg0, %c0_i32, %arg1 : i32, i32, i32
  }
}

</mosaic_0001>

<bundles_post_ra>
// kernel: _lambda_.5
= control target key start
LH: loop header
LB: loop body
LE: loop exit
PB: predicated region body
PF: predicated region fallthrough
CT: control target
= control target key end

     0   :  { %vm21_vm0 = vcmask 64512   ;;  %v183_v0 = vmov 0.0|0.0   ;;  %v184_v4 = vmov 0.0   ;;  %vm185_vm1 = vmmov 0   ;;  %s254_s1 = inlined_call_operand.vmem [shape: f32[1,72,8], index: 1, kind: input, shape index: {}]   ;;  %s255_s2 = inlined_call_operand.vmem [shape: f32[8,1], index: 2, kind: input, shape index: {}]   ;;  %s256_s3 = inlined_call_operand.vmem [shape: f32[8,1], index: 3, kind: input, shape index: {}]   ;;  %s257_s0 = inlined_call_operand.vmem [shape: f32[8,72], index: 0, kind: input, shape index: {}]   ;;  %s258_s4 = inlined_call_operand.vmem [shape: f32[1,8,8], index: 4, kind: output, shape index: {}]  }
   0x1   :  { %166 = vmatprep.subr.bf16.mxu0 %v183_v0  ;;  %v23_v1 = vld [vmem:[%s254_s1] sm:$0xff]  ;;  %v24_v2 = vld [vmem:[%s254_s1 + $0x8] sm:$0xff]  ;;  %v25_v3 = vld [vmem:[%s254_s1 + $0x10] sm:$0xff]  ;;  %22 = vst.msk [vmem:[#allocation2] sm:$0xff] %vm21_vm0, %v184_v4  ;;  %163 = vmatprep.mubr.msk.f32.mxu0 %vm185_vm1, %v184_v4  ;;  %v186_v7 = vmov 0   ;;  %vm34_vm2 = vcmask 588800  }
   0x2   :  { %v167_v5 = vpack.c.bf16 %v24_v2, %v23_v1  ;;  %v26_v6 = vld [vmem:[%s254_s1 + $0x18] sm:$0xff]  ;;  %182 = vset.pattern.permute.xlu0 %v186_v7  ;;  %v115_v9 = vld [vmem:[%s255_s2] sm:$0xff]  ;;  %v28_v11 = vld [vmem:[%s254_s1 + $0x28] sm:$0xff] }
   0x3   :  { %v170_v8 = vpack.c.bf16 %v26_v6, %v25_v3  ;;  %v27_v10 = vld [vmem:[%s254_s1 + $0x20] sm:$0xff]  ;;  %118 = vperm.xlu0 %182, %v115_v9   ;;  %v29_v14 = vld [vmem:[%s254_s1 + $0x30] sm:$0xff]  ;;  %v30_v15 = vld [vmem:[%s254_s1 + $0x38] sm:$0xff] }
   0x4   :  { %168 = vmatpush3.bf16.msra.mxu0 %v167_v5  ;;  %v122_v12 = vld [vmem:[%s256_s3] sm:$0xff]  ;;  %v173_v13 = vpack.c.bf16 %v28_v11, %v27_v10  ;;  %v176_v16 = vpack.c.bf16 %v30_v15, %v29_v14 }
   0x5   :  { %169 = vmatprep.subr.bf16.mxu0 %v183_v0  ;;  %v31_v17 = vld [vmem:[%s254_s1 + $0x40] sm:$0xff] }
   0x6   :  { %v33_v18 = vld [vmem:[%s257_s0] sm:$0xff] }
   0x7   :  { %125 = vperm.xlu0 %182, %v122_v12  }
   0x8   :  { %171 = vmatpush3.bf16.msra.mxu0 %v170_v8  ;;  %v32_v19 = vld [vmem:[#allocation2] sm:$0xff] }
   0x9   :  { %172 = vmatprep.subr.bf16.mxu0 %v183_v0 }
   0xc   :  { %174 = vmatpush3.bf16.msra.mxu0 %v173_v13 }
   0xd   :  { %175 = vmatprep.subr.bf16.mxu0 %v183_v0 }
  0x10   :  { %177 = vmatpush3.bf16.msra.mxu0 %v176_v16 }
  0x11   :  { %161 = vmatprep.subr.mxu0 %v184_v4 }
  0x14   :  { %162 = vmatpush3.msra.mxu0 %v31_v17 }
  0x15   :  { %164 = vmatmul.mubr.msk.f32.vlgmr.msra.gmra.mrb[0].mxu0 %vm34_vm2, %v33_v18 }
  0x82   :  { %v119_v23 = vpop.permute.xlu0 %118 }
  0x86   :  { %v126_v26 = vpop.permute.xlu0 %125 }
  0xe8   :  { %v104_v20 = vpop.f32.mrb[0].mxu0 }
  0xe9   :  { %v108_v21 = vadd.f32 %v104_v20, %v32_v19  ;;  %v165_v22 = vpop.f32.mrb[1].mxu0 }
  0xeb   :  { %110 = vst.msk [vmem:[#allocation2] sm:$0xff] %vm21_vm0, %v108_v21 }
  0xf2   :  { %v114_v24 = vld [vmem:[#allocation2] sm:$0xff] }
  0xf3   :  { %v121_v25 = vmul.f32 %v119_v23, %v114_v24 }
  0xf5   :  { %v128_v27 = vadd.f32 %v126_v26, %v121_v25 }
  0xf7   :  { %129 = vst.msk [vmem:[%s258_s4] sm:$0xff] %vm21_vm0, %v128_v27 }

// kernel: _lambda_.6
= control target key start
LH: loop header
LB: loop body
LE: loop exit
PB: predicated region body
PF: predicated region fallthrough
CT: control target
= control target key end

     0   :  { %vm21_vm0 = vcmask 15360   ;;  %v192_v0 = vmov 0.0|0.0   ;;  %v193_v4 = vmov 0.0   ;;  %vm194_vm1 = vmmov 0   ;;  %s263_s1 = inlined_call_operand.vmem [shape: f32[1,72,2], index: 1, kind: input, shape index: {}]   ;;  %s264_s2 = inlined_call_operand.vmem [shape: f32[8,1], index: 2, kind: input, shape index: {}]   ;;  %s265_s3 = inlined_call_operand.vmem [shape: f32[8,1], index: 3, kind: input, shape index: {}]   ;;  %s266_s0 = inlined_call_operand.vmem [shape: f32[8,72], index: 0, kind: input, shape index: {}]   ;;  %s267_s4 = inlined_call_operand.vmem [shape: f32[1,8,2], index: 4, kind: output, shape index: {}]  }
   0x1   :  { %175 = vmatprep.subr.bf16.mxu0 %v192_v0  ;;  %v23_v1 = vld [vmem:[%s263_s1] sm:$0xff]  ;;  %v24_v2 = vld [vmem:[%s263_s1 + $0x8] sm:$0xff]  ;;  %v25_v3 = vld [vmem:[%s263_s1 + $0x10] sm:$0xff]  ;;  %22 = vst.msk [vmem:[#allocation2] sm:$0xff] %vm21_vm0, %v193_v4  ;;  %172 = vmatprep.mubr.msk.f32.mxu0 %vm194_vm1, %v193_v4  ;;  %v195_v9 = vmov 0   ;;  %vm43_vm2 = vcmask 588800  }
   0x2   :  { %v32_v5 = vmax.f32 %v23_v1, 0.0  ;;  %v33_v6 = vmax.f32 %v24_v2, 0.0  ;;  %v26_v7 = vld [vmem:[%s263_s1 + $0x18] sm:$0xff]  ;;  %v34_v8 = vmax.f32 %v25_v3, 0.0  ;;  %191 = vset.pattern.permute.xlu0 %v195_v9  ;;  %v27_v11 = vld [vmem:[%s263_s1 + $0x20] sm:$0xff]  ;;  %v28_v12 = vld [vmem:[%s263_s1 + $0x28] sm:$0xff] }
   0x3   :  { %v35_v10 = vmax.f32 %v26_v7, 0.0  ;;  %v124_v14 = vld [vmem:[%s264_s2] sm:$0xff]  ;;  %v36_v16 = vmax.f32 %v27_v11, 0.0  ;;  %v37_v17 = vmax.f32 %v28_v12, 0.0  ;;  %v29_v19 = vld [vmem:[%s263_s1 + $0x30] sm:$0xff]  ;;  %v30_v20 = vld [vmem:[%s263_s1 + $0x38] sm:$0xff] }
   0x4   :  { %v176_v13 = vpack.c.bf16 %v33_v6, %v32_v5  ;;  %127 = vperm.xlu0 %191, %v124_v14   ;;  %v131_v18 = vld [vmem:[%s265_s3] sm:$0xff]  ;;  %v38_v22 = vmax.f32 %v29_v19, 0.0  ;;  %v39_v23 = vmax.f32 %v30_v20, 0.0 }
   0x5   :  { %v179_v15 = vpack.c.bf16 %v35_v10, %v34_v8  ;;  %v182_v21 = vpack.c.bf16 %v37_v17, %v36_v16  ;;  %v31_v25 = vld [vmem:[%s263_s1 + $0x40] sm:$0xff] }
   0x6   :  { %177 = vmatpush3.bf16.msra.mxu0 %v176_v13  ;;  %v185_v24 = vpack.c.bf16 %v39_v23, %v38_v22  ;;  %v40_v26 = vmax.f32 %v31_v25, 0.0  ;;  %v42_v27 = vld [vmem:[%s266_s0] sm:$0xff] }
   0x7   :  { %178 = vmatprep.subr.bf16.mxu0 %v192_v0 }
   0x8   :  { %134 = vperm.xlu0 %191, %v131_v18   ;;  %v41_v28 = vld [vmem:[#allocation2] sm:$0xff] }
   0xa   :  { %180 = vmatpush3.bf16.msra.mxu0 %v179_v15 }
   0xb   :  { %181 = vmatprep.subr.bf16.mxu0 %v192_v0 }
   0xe   :  { %183 = vmatpush3.bf16.msra.mxu0 %v182_v21 }
   0xf   :  { %184 = vmatprep.subr.bf16.mxu0 %v192_v0 }
  0x12   :  { %186 = vmatpush3.bf16.msra.mxu0 %v185_v24 }
  0x13   :  { %170 = vmatprep.subr.mxu0 %v193_v4 }
  0x16   :  { %171 = vmatpush3.msra.mxu0 %v40_v26 }
  0x17   :  { %173 = vmatmul.mubr.msk.f32.vlgmr.msra.gmra.mrb[0].mxu0 %vm43_vm2, %v42_v27 }
  0x83   :  { %v128_v32 = vpop.permute.xlu0 %127 }
  0x87   :  { %v135_v35 = vpop.permute.xlu0 %134 }
  0xea   :  { %v113_v29 = vpop.f32.mrb[0].mxu0 }
  0xeb   :  { %v117_v30 = vadd.f32 %v113_v29, %v41_v28  ;;  %v174_v31 = vpop.f32.mrb[1].mxu0 }
  0xed   :  { %119 = vst.msk [vmem:[#allocation2] sm:$0xff] %vm21_vm0, %v117_v30 }
  0xf4   :  { %v123_v33 = vld [vmem:[#allocation2] sm:$0xff] }
  0xf5   :  { %v130_v34 = vmul.f32 %v128_v32, %v123_v33 }
  0xf7   :  { %v137_v36 = vadd.f32 %v135_v35, %v130_v34 }
  0xf9   :  { %138 = vst.msk [vmem:[%s267_s4] sm:$0xff] %vm21_vm0, %v137_v36 }

// kernel: _lambda_.7
= control target key start
LH: loop header
LB: loop body
LE: loop exit
PB: predicated region body
PF: predicated region fallthrough
CT: control target
= control target key end

     0   :  { %s601_s15 = smov 0   ;;  %s603_s16 = smov 0   ;;  %s643_s0 = inlined_call_operand.vmem [shape: f32[8,4], index: 0, kind: input, shape index: {}]   ;;  %s644_s1 = inlined_call_operand.vmem [shape: f32[2,4,256], index: 1, kind: input, shape index: {}]   ;;  %s645_s2 = inlined_call_operand.vmem [shape: f32[8,1], index: 2, kind: input, shape index: {}]   ;;  %s646_s3 = inlined_call_operand.vmem [shape: f32[8,1], index: 3, kind: input, shape index: {}]   ;;  %s647_s4 = inlined_call_operand.vmem [shape: f32[2,8,256], index: 4, kind: output, shape index: {}]  }
   0x1   :  { %s605_s17 = smov 0  }
   0x2 LB: > { %s33_s18 = sadd.s32 1, %s568_s16  ;;  %p510_p0 = scmp.ge.s32.totalorder %s572_s17, 1  ;;  %s572_s17 = sphi %s605_s17, %s14_s17   ;;  %s568_s16 = sphi %s603_s16, %s649_s16   ;;  %s564_s15 = sphi %s601_s15, %s648_s15  }
   0x3   : > { %p35_p1 = scmp.ge.s32.totalorder %s33_s18, 2  ;;  %p205_p2 = scmp.lt.s32.totalorder %s572_s17, 3 }
   0x5   : > { %s651_s18 = smov (%p35_p1, %s33_s18), 0  ;;  %p206_p3 = pnand %p510_p0, %p205_p2 }
   0x6   : > { %p252_p4 = scmp.lt.s32.totalorder (!%p206_p3), %s564_s15, 1  ;;  %v574_v0 = vmov (!%p206_p3), 0.0   ;;  %v575_v1 = vmov (!%p206_p3), 0   ;;  %v376_v2 = vld [vmem:[%s645_s2] sm:$0xff] (!%p206_p3)  ;;  %vm291_vm0 = vcmask (!%p206_p3), 1043456   ;;  %vm287_vm1 = vcmask (!%p206_p3), 31744  }
   0x7   : > { %209 = sbr.rel (%p206_p3) target bundleno = 240 (0xf0), region = 36  ;;  %360 = vmatprep.mubr.f32.mxu0 (!%p206_p3), %v574_v0  ;;  %548 = vset.pattern.permute.xlu0 (!%p206_p3), %v575_v1  ;;  %v384_v3 = vld [vmem:[%s646_s3] sm:$0xff] (!%p206_p3) }
   0x8   : > { %379 = vperm.xlu0 (!%p206_p3), %548, %v376_v2   ;;  %v284_v6 = vld [vmem:[%s643_s0] sm:$0xff] (!%p206_p3) }
   0xc   : > { %387 = vperm.xlu0 (!%p206_p3), %548, %v384_v3  }
   0xe   : > { %s653_s15 = smov (!%p252_p4, %s564_s15), 1 }
   0xf   : > { %s520_s23 = sshll.u32 %s653_s15, 3  ;;  %s521_s29 = sshll.u32 %s653_s15, 4 }
  0x10   : > { %s263_s26 = scalar_lea.vmem %s644_s1, %s520_s23  ;;  %s273_s6 = scalar_lea.vmem %s647_s4, %s521_s29 }
  0x11   : > { %v281_v4 = vld [vmem:[%s263_s26] sm:$0xff] }
  0x12   : > { %v286_v5 = vcombine.high %v281_v4, %v281_v4 }
  0x14   : > { %515 = vmatprep.subr.msk.mxu0 %vm291_vm0, %v286_v5 }
  0x15   : > { %516 = vmatpush1.msk.msra.mxu0 %vm291_vm0, %v281_v4 }
  0x16   : > { %517 = vmatmul.mubr.msk.f32.vlgmr.msra.gmra.mrb[0].mxu0 %vm287_vm1, %v284_v6 }
  0x87   : > { %v380_v7 = vpop.permute.xlu0 %379 }
  0x8b   : > { %v388_v11 = vpop.permute.xlu0 %387 }
  0xe9   : > { %v362_v8 = vpop.f32.mrb[0].mxu0 }
  0xea   : > { %v382_v9 = vmul.f32 %v380_v7, %v362_v8  ;;  %v364_v10 = vpop.f32.mrb[1].mxu0 }
  0xeb   : > { %v383_v12 = vmul.f32 %v380_v7, %v364_v10 }
  0xec   : > { %v390_v13 = vadd.f32 %v388_v11, %v382_v9 }
  0xed   : > { %v391_v14 = vadd.f32 %v388_v11, %v383_v12 }
  0xee   : > { %392 = vst [vmem:[%s273_s6] sm:$0xff] %v390_v13 }
  0xef   : > { %393 = vst [vmem:[%s273_s6 + $0x8] sm:$0xff] %v391_v14 }
  0xf0 PF: > { %s14_s17 = sadd.s32 1, %s572_s17   ;;  %s648_s15 = smov %s568_s16 }
  0xf1   : > { %p11_p5 = scmp.ge.s32.totalorder %s14_s17, 4   ;;  %s649_s16 = smov %s651_s18 }
  0xf3   :  { %13 = sbr.rel (!%p11_p5) target bundleno = 2 (0x2), region = 77 }

// kernel: _lambda_.8
= control target key start
LH: loop header
LB: loop body
LE: loop exit
PB: predicated region body
PF: predicated region fallthrough
CT: control target
= control target key end

     0   :  { %s563_s15 = smov 0   ;;  %s565_s16 = smov 0   ;;  %s608_s0 = inlined_call_operand.vmem [shape: f32[8,6], index: 0, kind: input, shape index: {}]   ;;  %s609_s1 = inlined_call_operand.vmem [shape: f32[2,6,64], index: 1, kind: input, shape index: {}]   ;;  %s610_s2 = inlined_call_operand.vmem [shape: f32[8,1], index: 2, kind: input, shape index: {}]   ;;  %s611_s3 = inlined_call_operand.vmem [shape: f32[8,1], index: 3, kind: input, shape index: {}]   ;;  %s612_s4 = inlined_call_operand.vmem [shape: f32[2,8,64], index: 4, kind: output, shape index: {}]  }
   0x1   :  { %s567_s17 = smov 0  }
   0x2 LB: > { %s33_s18 = sadd.s32 1, %s529_s16  ;;  %p469_p0 = scmp.ge.s32.totalorder %s533_s17, 1  ;;  %s533_s17 = sphi %s567_s17, %s14_s17   ;;  %s529_s16 = sphi %s565_s16, %s614_s16   ;;  %s525_s15 = sphi %s563_s15, %s613_s15  }
   0x3   : > { %p35_p1 = scmp.ge.s32.totalorder %s33_s18, 2  ;;  %p201_p2 = scmp.lt.s32.totalorder %s533_s17, 3 }
   0x5   : > { %s616_s18 = smov (%p35_p1, %s33_s18), 0  ;;  %p202_p3 = pnand %p469_p0, %p201_p2 }
   0x6   : > { %vm263_vm0 = vcmask (!%p202_p3), 523264   ;;  %p242_p4 = scmp.lt.s32.totalorder (!%p202_p3), %s525_s15, 1  ;;  %v535_v0 = vmov (!%p202_p3), 0.0   ;;  %vm536_vm1 = vmmov (!%p202_p3), 0   ;;  %v353_v1 = vld [vmem:[%s610_s2] sm:$0xff] (!%p202_p3)  ;;  %v537_v2 = vmov (!%p202_p3), 0  }
   0x7   : > { %205 = sbr.rel (%p202_p3) target bundleno = 246 (0xf6), region = 36  ;;  %264 = vst.msk [vmem:[#allocation2] sm:$0xff] (!%p202_p3), %vm263_vm0, %v535_v0  ;;  %478 = vmatprep.subr.mxu0 (!%p202_p3), %v535_v0  ;;  %480 = vmatprep.mubr.msk.f32.mxu0 (!%p202_p3), %vm536_vm1, %v535_v0  ;;  %vm272_vm2 = vcmask (!%p202_p3), 1045504   ;;  %v360_v3 = vld [vmem:[%s611_s3] sm:$0xff] (!%p202_p3)  ;;  %vm268_vm3 = vcmask (!%p202_p3), 48128  }
   0x8   : > { %510 = vset.pattern.permute.xlu0 (!%p202_p3), %v537_v2  ;;  %v267_v4 = vld [vmem:[%s608_s0] sm:$0xff] (!%p202_p3) }
   0x9   : > { %356 = vperm.xlu0 (!%p202_p3), %510, %v353_v1  }
   0xd   : > { %363 = vperm.xlu0 (!%p202_p3), %510, %v360_v3  }
   0xe   : > { %s618_s15 = smov (!%p242_p4, %s525_s15), 1  ;;  %v266_v6 = vld [vmem:[#allocation2] sm:$0xff] }
   0xf   : > { %s470_s21 = sshll.u32 %s618_s15, 3 }
  0x10   : > { %s251_s26 = scalar_lea.vmem %s609_s1, %s470_s21  ;;  %s258_s5 = scalar_lea.vmem %s612_s4, %s470_s21 }
  0x11   : > { %v265_v5 = vld [vmem:[%s251_s26] sm:$0x3f] }
  0x12   : > { %479 = vmatpush3.msk.msra.mxu0 %vm272_vm2, %v265_v5 }
  0x13   : > { %481 = vmatmul.mubr.msk.f32.vlgmr.msra.gmra.mrb[0].mxu0 %vm268_vm3, %v267_v4 }
  0x88   : > { %v357_v10 = vpop.permute.xlu0 %356 }
  0x8c   : > { %v364_v13 = vpop.permute.xlu0 %363 }
  0xe6   : > { %v342_v7 = vpop.f32.mrb[0].mxu0 }
  0xe7   : > { %v346_v8 = vadd.f32 %v342_v7, %v266_v6  ;;  %v482_v9 = vpop.f32.mrb[1].mxu0 }
  0xe9   : > { %348 = vst.msk [vmem:[#allocation2] sm:$0xff] %vm263_vm0, %v346_v8 }
  0xf0   : > { %v352_v11 = vld [vmem:[#allocation2] sm:$0xff] }
  0xf1   : > { %v359_v12 = vmul.f32 %v357_v10, %v352_v11 }
  0xf3   : > { %v366_v14 = vadd.f32 %v364_v13, %v359_v12 }
  0xf5   : > { %367 = vst.msk [vmem:[%s258_s5] sm:$0xff] %vm263_vm0, %v366_v14 }
  0xf6 PF: > { %s14_s17 = sadd.s32 1, %s533_s17   ;;  %s613_s15 = smov %s529_s16 }
  0xf7   : > { %p11_p5 = scmp.ge.s32.totalorder %s14_s17, 4   ;;  %s614_s16 = smov %s616_s18 }
  0xf9   :  { %13 = sbr.rel (!%p11_p5) target bundleno = 2 (0x2), region = 77 }

// kernel: _lambda_.9
= control target key start
LH: loop header
LB: loop body
LE: loop exit
PB: predicated region body
PF: predicated region fallthrough
CT: control target
= control target key end

     0   :  { %s558_s15 = smov 0   ;;  %s560_s16 = smov 0   ;;  %s603_s0 = inlined_call_operand.vmem [shape: f32[8,8], index: 0, kind: input, shape index: {}]   ;;  %s604_s1 = inlined_call_operand.vmem [shape: f32[2,8,16], index: 1, kind: input, shape index: {}]   ;;  %s605_s2 = inlined_call_operand.vmem [shape: f32[8,1], index: 2, kind: input, shape index: {}]   ;;  %s606_s3 = inlined_call_operand.vmem [shape: f32[8,1], index: 3, kind: input, shape index: {}]   ;;  %s607_s4 = inlined_call_operand.vmem [shape: f32[2,8,16], index: 4, kind: output, shape index: {}]  }
   0x1   :  { %s562_s17 = smov 0  }
   0x2 LB: > { %s33_s18 = sadd.s32 1, %s524_s16  ;;  %p465_p0 = scmp.ge.s32.totalorder %s528_s17, 1  ;;  %s528_s17 = sphi %s562_s17, %s14_s17   ;;  %s524_s16 = sphi %s560_s16, %s609_s16   ;;  %s520_s15 = sphi %s558_s15, %s608_s15  }
   0x3   : > { %p35_p1 = scmp.ge.s32.totalorder %s33_s18, 2  ;;  %p201_p2 = scmp.lt.s32.totalorder %s528_s17, 3 }
   0x5   : > { %s611_s18 = smov (%p35_p1, %s33_s18), 0  ;;  %p202_p3 = pnand %p465_p0, %p201_p2 }
   0x6   : > { %vm263_vm0 = vcmask (!%p202_p3), 130048   ;;  %p242_p4 = scmp.lt.s32.totalorder (!%p202_p3), %s520_s15, 1  ;;  %v530_v0 = vmov (!%p202_p3), 0.0   ;;  %vm531_vm1 = vmmov (!%p202_p3), 0   ;;  %v349_v1 = vld [vmem:[%s605_s2] sm:$0xff] (!%p202_p3)  ;;  %v532_v2 = vmov (!%p202_p3), 0  }
   0x7   : > { %205 = sbr.rel (%p202_p3) target bundleno = 246 (0xf6), region = 36  ;;  %264 = vst.msk [vmem:[#allocation2] sm:$0xff] (!%p202_p3), %vm263_vm0, %v530_v0  ;;  %473 = vmatprep.subr.mxu0 (!%p202_p3), %v530_v0  ;;  %475 = vmatprep.mubr.msk.f32.mxu0 (!%p202_p3), %vm531_vm1, %v530_v0  ;;  %v356_v3 = vld [vmem:[%s606_s3] sm:$0xff] (!%p202_p3)  ;;  %vm268_vm2 = vcmask (!%p202_p3), 64512  }
   0x8   : > { %505 = vset.pattern.permute.xlu0 (!%p202_p3), %v532_v2  ;;  %v267_v4 = vld [vmem:[%s603_s0] sm:$0xff] (!%p202_p3) }
   0x9   : > { %352 = vperm.xlu0 (!%p202_p3), %505, %v349_v1  }
   0xd   : > { %359 = vperm.xlu0 (!%p202_p3), %505, %v356_v3  }
   0xe   : > { %s613_s15 = smov (!%p242_p4, %s520_s15), 1  ;;  %v266_v6 = vld [vmem:[#allocation2] sm:$0xff] }
   0xf   : > { %s466_s21 = sshll.u32 %s613_s15, 3 }
  0x10   : > { %s251_s26 = scalar_lea.vmem %s604_s1, %s466_s21  ;;  %s258_s5 = scalar_lea.vmem %s607_s4, %s466_s21 }
  0x11   : > { %v265_v5 = vld [vmem:[%s251_s26] sm:$0xff] }
  0x12   : > { %474 = vmatpush3.msra.mxu0 %v265_v5 }
  0x13   : > { %476 = vmatmul.mubr.msk.f32.vlgmr.msra.gmra.mrb[0].mxu0 %vm268_vm2, %v267_v4 }
  0x88   : > { %v353_v10 = vpop.permute.xlu0 %352 }
  0x8c   : > { %v360_v13 = vpop.permute.xlu0 %359 }
  0xe6   : > { %v338_v7 = vpop.f32.mrb[0].mxu0 }
  0xe7   : > { %v342_v8 = vadd.f32 %v338_v7, %v266_v6  ;;  %v477_v9 = vpop.f32.mrb[1].mxu0 }
  0xe9   : > { %344 = vst.msk [vmem:[#allocation2] sm:$0xff] %vm263_vm0, %v342_v8 }
  0xf0   : > { %v348_v11 = vld [vmem:[#allocation2] sm:$0xff] }
  0xf1   : > { %v355_v12 = vmul.f32 %v353_v10, %v348_v11 }
  0xf3   : > { %v362_v14 = vadd.f32 %v360_v13, %v355_v12 }
  0xf5   : > { %363 = vst.msk [vmem:[%s258_s5] sm:$0xff] %vm263_vm0, %v362_v14 }
  0xf6 PF: > { %s14_s17 = sadd.s32 1, %s528_s17   ;;  %s608_s15 = smov %s524_s16 }
  0xf7   : > { %p11_p5 = scmp.ge.s32.totalorder %s14_s17, 4   ;;  %s609_s16 = smov %s611_s18 }
  0xf9   :  { %13 = sbr.rel (!%p11_p5) target bundleno = 2 (0x2), region = 77 }

</bundles_post_ra>
